<compile_context>
chip_gen: v6e
topology: v6e:2x2x1
jax: 0.10.0
libtpu: 0.0.40
codegen_flags: <defaults>
</compile_context>

<pallas_src>
import jax
import jax.numpy as jnp
from jax.experimental import pallas as pl
from jax.experimental.pallas import tpu as pltpu

LANES = 128


def _round_up(a, b):
    return (a + b - 1) // b * b


def _sigmoid_kernel(x_ref, o_ref):
    # Exact logistic via tanh: sigmoid(x) = 0.5 * tanh(x/2) + 0.5.
    # tanh lives on the EUP slot, fully hidden under the HBM DMA; it saturates
    # cleanly for large |x| so there is no exp overflow edge case.
    xf = x_ref[...].astype(jnp.float32)
    o_ref[...] = (0.5 * jnp.tanh(0.5 * xf) + 0.5).astype(o_ref.dtype)


def _tpu_vmem_capacity_bytes():
    # Trace-time hardware query; fall back to the smallest per-TC VMEM (v7x).
    try:
        return int(pltpu.get_tpu_info().vmem_capacity_bytes)
    except Exception:
        return 64 << 20


def _num_tensorcores_per_chip():
    # v7x has 2 TensorCores per chip (megacore sharding of "parallel" grid axes);
    # v5e / v6e have 1.
    try:
        kind = jax.devices()[0].device_kind.lower()
        if "7" in kind:
            return 2
    except Exception:
        pass
    return 1


def sigmoid_pallas(x, *, max_block_bytes=4 * 1024 * 1024, small_input_fallback=True):
    """Elementwise sigmoid via a Pallas TPU kernel (forward of the PyTorch Sigmoid)."""
    orig_shape = x.shape
    dtype = x.dtype
    n = x.size
    if n == 0:
        return x

    itemsize = jnp.dtype(dtype).itemsize
    # Sublane packing of the I/O dtype: 8 rows f32, 16 bf16/f16, 32 int8/fp8.
    packing = max(8, 32 // max(itemsize, 1))

    # Small inputs: launch + pipeline prologue/epilogue + the lost XLA fusion
    # opportunity outweigh any benefit; the fused XLA elementwise is at roofline.
    if small_input_fallback and n * itemsize < (1 << 20):
        xf = x.astype(jnp.float32)
        return (0.5 * jnp.tanh(0.5 * xf) + 0.5).astype(dtype)

    rows = pl.cdiv(n, LANES)
    num_cores = _num_tensorcores_per_chip()

    # ---- Per-generation VMEM budget / block sizing --------------------------
    vmem_cap = _tpu_vmem_capacity_bytes()
    # Explicit scoped-VMEM limit: stay well inside physical VMEM (64 MiB/TC on
    # v7x, 128 MiB on v5e/v6e) and leave room for Mosaic internal scratch.
    vmem_limit = max(32 << 20, min(vmem_cap - (16 << 20), 64 << 20))
    if num_cores > 1:
        vmem_limit = min(vmem_limit, 48 << 20)   # v7x: 64 MiB physical per TC
    vmem_budget = vmem_limit - (8 << 20)          # headroom for internal scratch

    # VMEM per block-row: 4 double-buffered I/O buffers at the I/O dtype plus a
    # conservative ~6 block-sized f32 temporaries for the in-kernel upcast math.
    per_row_bytes = 4 * LANES * itemsize + 6 * LANES * 4
    rows_cap = max(packing, vmem_budget // per_row_bytes // packing * packing)
    rows_param = max(packing, max_block_bytes // (LANES * itemsize) // packing * packing)
    max_block_rows = min(rows_cap, rows_param)

    tile_rows = min(max_block_rows, rows)
    if tile_rows < rows:
        # Block shape must keep the sublane dim a multiple of 8 (we use the
        # dtype packing) unless it equals the full array dim.
        tile_rows = max(packing, tile_rows // packing * packing)
    num_steps = pl.cdiv(rows, tile_rows)

    # ---- Megacore balancing (only on chips with >1 TensorCore, i.e. v7x) ----
    if num_cores > 1 and rows > packing and num_steps % num_cores != 0:
        target_steps = num_steps + (num_cores - num_steps % num_cores)
        tile_rows = min(_round_up(pl.cdiv(rows, target_steps), packing), rows)
        num_steps = pl.cdiv(rows, tile_rows)
    grid = (num_steps,)

    # ---- Lane alignment ------------------------------------------------------
    # Pad only to a multiple of 128 (lane width); sublane-ragged / partial last
    # row-blocks are handled by Pallas block masking, so the aligned case has no
    # extra HBM copies at all.
    pad = rows * LANES - n
    x_flat = jnp.ravel(x)
    if pad:
        x_flat = jnp.pad(x_flat, (0, pad))
    x2d = x_flat.reshape(rows, LANES)

    cost = pl.CostEstimate(
        flops=4 * n,
        transcendentals=n,
        bytes_accessed=2 * n * itemsize,
    )

    out = pl.pallas_call(
        _sigmoid_kernel,
        out_shape=jax.ShapeDtypeStruct((rows, LANES), dtype),
        grid_spec=pltpu.PrefetchScalarGridSpec(
            num_scalar_prefetch=0,
            grid=grid,
            in_specs=[pl.BlockSpec((tile_rows, LANES), lambda i: (i, 0))],
            out_specs=pl.BlockSpec((tile_rows, LANES), lambda i: (i, 0)),
        ),
        compiler_params=pltpu.CompilerParams(
            dimension_semantics=("parallel",),
            vmem_limit_bytes=int(vmem_limit),
        ),
        cost_estimate=cost,
    )(x2d)

    out_flat = out.reshape(-1)
    if pad:
        out_flat = out_flat[:n]
    return out_flat.reshape(orig_shape)


# TODO(synk): only the forward pass is implemented; the module's backward()
# (sigmoid'(x) * grad) is left to JAX autodiff / a separate kernel.


if __name__ == "__main__":
    key = jax.random.PRNGKey(0)
    k1, k2, k3, k4, k5 = jax.random.split(key, 5)

    def ref_sigmoid(v):
        vf = v.astype(jnp.float32)
        return (1.0 / (1.0 + jnp.exp(-vf))).astype(v.dtype)

    # 1) Module-consistent NCHW shape; force the kernel path (small tensor).
    x1 = jax.random.normal(k1, (2, 4, 16, 16), dtype=jnp.float32)
    y1 = jax.block_until_ready(sigmoid_pallas(x1, small_input_fallback=False))
    assert y1.shape == x1.shape and y1.dtype == x1.dtype
    assert jnp.max(jnp.abs(y1 - ref_sigmoid(x1))) < 2e-6

    # 2) Odd size (not a multiple of 128): exercises the (rare) lane-pad path.
    x2 = jax.random.normal(k2, (2, 3, 5, 7), dtype=jnp.float32)
    y2 = jax.block_until_ready(sigmoid_pallas(x2, small_input_fallback=False))
    assert y2.shape == x2.shape and y2.dtype == x2.dtype
    assert jnp.max(jnp.abs(y2 - ref_sigmoid(x2))) < 2e-6

    # 3) Medium f32 (2 MiB): takes the kernel path under the default fallback rule.
    x3 = jax.random.normal(k3, (16, 16, 32, 64), dtype=jnp.float32)
    y3 = jax.block_until_ready(sigmoid_pallas(x3))
    assert y3.shape == x3.shape and jnp.max(jnp.abs(y3 - ref_sigmoid(x3))) < 2e-6

    # 4) Larger f32 (8 MiB): multi-step grid with large blocks, no padding.
    x4 = jax.random.normal(k4, (8, 16, 128, 128), dtype=jnp.float32)
    y4 = jax.block_until_ready(sigmoid_pallas(x4))
    assert y4.shape == x4.shape and jnp.max(jnp.abs(y4 - ref_sigmoid(x4))) < 2e-6

    # 5) bf16: sublane packing = 16 path, output stays bf16.
    x5 = jax.random.normal(k5, (4, 4, 16, 32), dtype=jnp.bfloat16)
    y5 = jax.block_until_ready(sigmoid_pallas(x5, small_input_fallback=False))
    assert y5.shape == x5.shape and y5.dtype == jnp.bfloat16
    diff5 = jnp.max(jnp.abs(y5.astype(jnp.float32) - ref_sigmoid(x5).astype(jnp.float32)))
    assert diff5 < 1e-2

    # 6) Tiny input uses the jnp fallback (still exact), same semantics.
    x6 = jax.random.normal(k1, (2, 4, 4, 4), dtype=jnp.float32)
    y6 = jax.block_until_ready(sigmoid_pallas(x6))
    assert jnp.max(jnp.abs(y6 - ref_sigmoid(x6))) < 2e-6

    print("KERNEL_OK")
</pallas_src>

<mosaic_0001>
module attributes {stable_mosaic.version = 11 : i64} {
  func.func @_sigmoid_kernel(%arg0: i32, %arg1: memref<16x128xf32, #tpu.memory_space<vmem>>, %arg2: memref<16x128xf32, #tpu.memory_space<vmem>>) attributes {dimension_semantics = [#tpu.dimension_semantics<parallel>], iteration_bounds = array<i64: 1>, scalar_prefetch = 0 : i64, scratch_operands = 0 : i64, tpu.core_type = #tpu.core_type<tc>, window_params = [{transform_indices = @transform_0, window_bounds = array<i64: 16, 128>}, {transform_indices = @transform_1, window_bounds = array<i64: 16, 128>}]} {
    %c0 = arith.constant 0 : index
    %c0_0 = arith.constant 0 : index
    %0 = vector.load %arg1[%c0, %c0_0] : memref<16x128xf32, #tpu.memory_space<vmem>>, vector<16x128xf32>
    %cst = arith.constant 5.000000e-01 : f32
    %1 = vector.broadcast %cst : f32 to vector<16x128xf32>
    %2 = arith.mulf %1, %0 : vector<16x128xf32>
    %3 = math.tanh %2 : vector<16x128xf32>
    %cst_1 = arith.constant 5.000000e-01 : f32
    %4 = vector.broadcast %cst_1 : f32 to vector<16x128xf32>
    %5 = arith.mulf %4, %3 : vector<16x128xf32>
    %cst_2 = arith.constant 5.000000e-01 : f32
    %6 = vector.broadcast %cst_2 : f32 to vector<16x128xf32>
    %7 = arith.addf %5, %6 : vector<16x128xf32>
    %c0_3 = arith.constant 0 : index
    %c0_4 = arith.constant 0 : index
    %8 = vector.load %arg2[%c0_3, %c0_4] : memref<16x128xf32, #tpu.memory_space<vmem>>, vector<16x128xf32>
    tpu.vector_store %arg2[%c0_3, %c0_4], %7 {strides = array<i32>} : memref<16x128xf32, #tpu.memory_space<vmem>>, vector<16x128xf32>,
    return
  }
  func.func @transform_0(%arg0: i32) -> (i32, i32) {
    %c0_i32 = arith.constant 0 : i32
    %c0_i32_0 = arith.constant 0 : i32
    return %arg0, %c0_i32 : i32, i32
  }
  func.func @transform_1(%arg0: i32) -> (i32, i32) {
    %c0_i32 = arith.constant 0 : i32
    %c0_i32_0 = arith.constant 0 : i32
    return %arg0, %c0_i32 : i32, i32
  }
}

</mosaic_0001>

<bundles_post_ra>
// kernel: tpu_custom_call.1
= control target key start
LH: loop header
LB: loop body
LE: loop exit
PB: predicated region body
PF: predicated region fallthrough
CT: control target
= control target key end

     0   :  { %6 = vsyncpa [#allocation3], 0  ;;  %s130_s0 = inlined_call_operand.hbm [shape: f32[16,128], index: 0, kind: input, shape index: {}]   ;;  %s131_s1 = inlined_call_operand.hbm [shape: f32[16,128], index: 1, kind: output, shape index: {}]  }
   0x1   :  { %7 = vsyncpa [#allocation4], 0  ;;  %s104_s6 = smov [#allocation2]  }
   0x2   :  { %s13_s7 = sshll.u32 %s104_s6, 4  ;;  %s14_s7 = int_to_ptr.vmem [resolvable:$true] %s13_s7 }
   0x3   :  { %s68_s8 = scalar_lea.vmem %s14_s7, 256  ;;  %p73_p1 = scmp.lt.s32.totalorder %s14_s7, %s14_s7 }
   0x4   :  { %p69_p0 = scmp.ne.s32.totalorder %s14_s7, %s68_s8  ;;  %p74_p2 = scmp.lt.s32.totalorder %s68_s8, %s68_s8 }
   0x6   :  { %p75_p3 = por %p74_p2, %p73_p1 }
   0x8   :  { %p76_p4 = pnand %p75_p3, %p69_p0 }
   0xa   :  { %79 = shalt.err (!%p76_p4)
}
   0xb   :  { %s105_s9 = smov 128   ;;  %s106_s10 = smov 8  }
   0xc   :  { %19 = dma.hbm_to_vmem [thread:$0]  %s130_s0, 256, %s14_s7, [#allocation3], %s105_s9, %s105_s9, %s106_s10  }
   0xd   :  { %100 = dma.done.wait [#allocation3], 256  }
   0xe   :  { %101 = vsyncadd [#allocation3], 4294967040  ;;  %v23_v0 = vld [vmem:[#allocation2] sm:$0xff]  ;;  %v24_v1 = vld [vmem:[#allocation2 + $0x8] sm:$0xff]  ;;  %s107_s13 = smov [#allocation5]  }
   0xf   :  { %v25_v2 = vmul.f32 0.5, %v23_v0  ;;  %v26_v3 = vmul.f32 0.5, %v24_v1  ;;  %s40_s14 = sshll.u32 %s107_s13, 4  ;;  %s41_s14 = int_to_ptr.vmem [resolvable:$true] %s40_s14 }
  0x10   :  { %s80_s0 = scalar_lea.vmem %s41_s14, 256  ;;  %p85_p6 = scmp.lt.s32.totalorder %s41_s14, %s41_s14 }
  0x11   :  { %56 = vtanh.f32 %v25_v2  ;;  %p81_p5 = scmp.ne.s32.totalorder %s41_s14, %s80_s0  ;;  %p86_p7 = scmp.lt.s32.totalorder %s80_s0, %s80_s0 }
  0x12   :  { %58 = vtanh.f32 %v26_v3 }
  0x13   :  { %p87_p8 = por %p86_p7, %p85_p6 }
  0x15   :  { %p88_p9 = pnand %p87_p8, %p81_p5 }
  0x1e   :  { %v57_v4 = vpop.eup %56 }
  0x1f   :  { %v59_v5 = vpop.eup %58  ;;  %v29_v6 = vmul.f32 0.5, %v57_v4 }
  0x20   :  { %v30_v7 = vmul.f32 0.5, %v59_v5 }
  0x21   :  { %v31_v8 = vadd.f32 0.5, %v29_v6 }
  0x22   :  { %v32_v9 = vadd.f32 0.5, %v30_v7 }
  0x23   :  { %33 = vst [vmem:[#allocation5] sm:$0xff] %v31_v8 }
  0x24   :  { %34 = vst [vmem:[#allocation5 + $0x8] sm:$0xff] %v32_v9 }
  0x25   :  { %91 = shalt.err (!%p88_p9)
}
  0x26   :  { %46 = dma.vmem_to_hbm [thread:$0]  %s41_s14, 256, %s131_s1, [#allocation4], %s105_s9, %s105_s9, %s106_s10  }
  0x27   :  { %102 = dma.done.wait [#allocation4], 256  }
  0x28   :  { %103 = vsyncadd [#allocation4], 4294967040 }
  0x29   :  { %50 = vsyncpa [#allocation3], 1 }
  0x2a   :  { %51 = vsyncpa [#allocation4], 1 }

</bundles_post_ra>
